<compile_context>
chip_gen: v6e
topology: v6e:2x2x1
jax: 0.10.0
libtpu: 0.0.40
codegen_flags: <defaults>
</compile_context>

<pallas_src>
import jax
import jax.numpy as jnp
from jax.experimental import pallas as pl
from jax.experimental.pallas import tpu as pltpu

HIDDEN = 128  # fixed by the module definition


def _round_up(v, m):
    return (v + m - 1) // m * m


def discriminator_kernel(x_ref, w1_ref, b1_ref, w2_ref, b2_ref, o_ref):
    """Fused forward pass for one batch tile.

    x_ref:  (TB, Fp)   bf16 input tile (zero-padded features)
    w1_ref: (Fp, 128)  bf16 first linear weight (stored [in, out])
    b1_ref: (1, 128)   f32 first linear bias (row)
    w2_ref: (1, 128)   f32 second linear weight as a row
    b2_ref: (1,)       f32 second linear bias, in SMEM
    o_ref:  (1, 1, TB) f32 sigmoid output, batch on the lane axis
    """
    # ---- Linear 1 on the MXU: bf16 operands, f32 accumulation ----
    h = jnp.dot(x_ref[...], w1_ref[...], preferred_element_type=jnp.float32)
    h = h + b1_ref[...]                         # (TB, 128) + (1, 128) broadcast

    # ---- LeakyReLU(0.1) on the VPU ----
    h = jnp.maximum(h, 0.1 * h)

    # ---- Linear 2 (out_features == 1), transposed formulation:
    #      (1, 128) . (TB, 128)^T -> (1, TB).  Full-width MXU pass (N = TB)
    #      instead of an N=1 matmul, and the result is natively lane-dense. ----
    logit = jax.lax.dot_general(
        w2_ref[...], h,
        dimension_numbers=(((1,), (1,)), ((), ())),
        preferred_element_type=jnp.float32,
    )                                           # (1, TB)
    logit = logit + b2_ref[0]                   # scalar bias from SMEM

    # ---- Sigmoid: exp on EUP, approximate reciprocal also on EUP ----
    sig = pl.reciprocal(1.0 + jnp.exp(-logit), approx=True)

    o_ref[...] = sig.reshape(o_ref.shape).astype(o_ref.dtype)


def _pick_batch_tile(B, Fp, requested):
    """Largest lane-aligned batch tile that fits a conservative VMEM budget."""
    bt = min(requested, _round_up(max(B, 1), 128))
    bt = max(128, _round_up(bt, 128))
    # Keep one bf16 x tile under ~16 MiB so the double-buffered pair plus the
    # resident weights fit v7x's 64 MiB VMEM (32 MiB scoped default) easily.
    budget = 16 << 20
    max_bt = max(128, (budget // (Fp * 2)) // 128 * 128)
    return min(bt, max_bt)


def discriminator_forward(x, w1, b1, w2, b2, *, batch_tile=512):
    """x: [B, F] float32.  w1: [F,128], b1: [128], w2: [128,1], b2: [1].

    Returns [B, 1] float32 in (0, 1), matching the torch module's forward.
    """
    B, F = x.shape
    Fp = _round_up(F, 128)
    bt = _pick_batch_tile(B, Fp, batch_tile)
    Bp = _round_up(B, bt)
    num_tiles = Bp // bt

    # Pad + cast the matmul operands to bf16 (kernel is HBM-bound on x;
    # bf16 halves bytes and doubles MXU rate). Everything else stays f32.
    x_p = jnp.pad(x.astype(jnp.bfloat16), ((0, Bp - B), (0, Fp - F)))
    w1_p = jnp.pad(w1.astype(jnp.bfloat16), ((0, Fp - F), (0, 0)))
    b1_r = b1.reshape(1, HIDDEN).astype(jnp.float32)
    w2_r = w2.reshape(1, HIDDEN).astype(jnp.float32)
    b2_s = b2.reshape(1).astype(jnp.float32)

    # VMEM budget: double-buffered x tile + resident params + headroom.
    x_tile_bytes = bt * Fp * 2
    param_bytes = Fp * HIDDEN * 2 + 3 * HIDDEN * 4
    out_tile_bytes = bt * 4
    vmem_needed = 2 * (x_tile_bytes + out_tile_bytes) + param_bytes
    vmem_limit = int(min(max(2 * vmem_needed + (8 << 20), 32 << 20), 64 << 20))

    out = pl.pallas_call(
        discriminator_kernel,
        out_shape=jax.ShapeDtypeStruct((num_tiles, 1, bt), jnp.float32),
        grid_spec=pltpu.PrefetchScalarGridSpec(
            num_scalar_prefetch=0,
            grid=(num_tiles,),
            in_specs=[
                # batch tile of the input (only array that streams from HBM)
                pl.BlockSpec((bt, Fp), lambda i: (i, 0)),
                # parameters: full-extent blocks, resident across the grid
                pl.BlockSpec((Fp, HIDDEN), lambda i: (0, 0)),
                pl.BlockSpec((1, HIDDEN), lambda i: (0, 0)),
                pl.BlockSpec((1, HIDDEN), lambda i: (0, 0)),
                # scalar bias lives in SMEM (no padded VMEM tile / DMA)
                pl.BlockSpec(memory_space=pltpu.MemorySpace.SMEM),
            ],
            # lane-dense output block: batch on the lane axis
            out_specs=pl.BlockSpec((1, 1, bt), lambda i: (i, 0, 0)),
        ),
        compiler_params=pltpu.CompilerParams(
            dimension_semantics=("parallel",),
            vmem_limit_bytes=vmem_limit,
        ),
    )(x_p, w1_p, b1_r, w2_r, b2_s)

    # Undo the lane-dense layout + batch padding: (num_tiles, 1, bt) -> (B, 1).
    return out.reshape(Bp)[:B].reshape(B, 1)


def init_params(key, in_features):
    """PyTorch-style init: U(-1/sqrt(fan_in), 1/sqrt(fan_in)).

    Weights stored as [in, out] (transposed relative to torch's [out, in]).
    """
    k1, k2, k3, k4 = jax.random.split(key, 4)
    bound1 = 1.0 / jnp.sqrt(in_features)
    bound2 = 1.0 / jnp.sqrt(HIDDEN)
    w1 = jax.random.uniform(k1, (in_features, HIDDEN), jnp.float32, -bound1, bound1)
    b1 = jax.random.uniform(k2, (HIDDEN,), jnp.float32, -bound1, bound1)
    w2 = jax.random.uniform(k3, (HIDDEN, 1), jnp.float32, -bound2, bound2)
    b2 = jax.random.uniform(k4, (1,), jnp.float32, -bound2, bound2)
    return w1, b1, w2, b2


def reference_forward(x, w1, b1, w2, b2):
    """Pure-JAX f32 reference identical to the torch forward semantics."""
    h = x @ w1 + b1
    h = jnp.where(h >= 0, h, 0.1 * h)
    logit = h @ w2 + b2
    return 1.0 / (1.0 + jnp.exp(-logit))


if __name__ == "__main__":
    key = jax.random.PRNGKey(0)
    k_params, k_x = jax.random.split(key)

    batch = 8
    in_features = 64

    w1, b1, w2, b2 = init_params(k_params, in_features)
    x = jax.random.normal(k_x, (batch, in_features), jnp.float32)

    out = discriminator_forward(x, w1, b1, w2, b2)
    out = jax.block_until_ready(out)

    ref = reference_forward(x, w1, b1, w2, b2)
    assert out.shape == (batch, 1), out.shape
    assert bool(jnp.all(jnp.isfinite(out)))
    # bf16 matmul operands + approximate EUP reciprocal => loose-but-safe atol
    # on a (0, 1)-valued output.
    assert jnp.allclose(out, ref, atol=2e-2, rtol=0.0), (out, ref)

    print("KERNEL_OK")
</pallas_src>

<mosaic_0001>
module attributes {stable_mosaic.version = 11 : i64} {
  func.func @discriminator_kernel(%arg0: i32, %arg1: memref<128x128xbf16, #tpu.memory_space<vmem>>, %arg2: memref<128x128xbf16, #tpu.memory_space<vmem>>, %arg3: memref<1x128xf32, #tpu.memory_space<vmem>>, %arg4: memref<1x128xf32, #tpu.memory_space<vmem>>, %arg5: memref<1xf32, #tpu.memory_space<smem>>, %arg6: memref<1x1x128xf32, #tpu.memory_space<vmem>>) attributes {dimension_semantics = [#tpu.dimension_semantics<parallel>], iteration_bounds = array<i64: 1>, scalar_prefetch = 0 : i64, scratch_operands = 0 : i64, tpu.core_type = #tpu.core_type<tc>, window_params = [{transform_indices = @transform_0, window_bounds = array<i64: 128, 128>}, {pipeline_mode = #tpu.pipeline_mode<synchronous>, transform_indices = @transform_1, window_bounds = array<i64: 128, 128>}, {pipeline_mode = #tpu.pipeline_mode<synchronous>, transform_indices = @transform_2, window_bounds = array<i64: 1, 128>}, {pipeline_mode = #tpu.pipeline_mode<synchronous>, transform_indices = @transform_3, window_bounds = array<i64: 1, 128>}, {transform_indices = @transform_4, window_bounds = array<i64: 1>}, {transform_indices = @transform_5, window_bounds = array<i64: 1, 1, 128>}]} {
    %c0 = arith.constant 0 : index
    %c0_0 = arith.constant 0 : index
    %0 = vector.load %arg1[%c0, %c0_0] : memref<128x128xbf16, #tpu.memory_space<vmem>>, vector<128x128xbf16>
    %c0_1 = arith.constant 0 : index
    %c0_2 = arith.constant 0 : index
    %1 = vector.load %arg2[%c0_1, %c0_2] : memref<128x128xbf16, #tpu.memory_space<vmem>>, vector<128x128xbf16>
    %cst = arith.constant dense<0.000000e+00> : vector<128x128xf32>
    %2 = tpu.matmul %0, %1, %cst {dimension_numbers = #tpu.dot_dimension_numbers<[1], [0], [0], [1], [0, 0, 1, 1], [], []>} : vector<128x128xbf16>, vector<128x128xbf16>, vector<128x128xf32> -> vector<128x128xf32>
    %c0_3 = arith.constant 0 : index
    %c0_4 = arith.constant 0 : index
    %3 = vector.load %arg3[%c0_3, %c0_4] : memref<1x128xf32, #tpu.memory_space<vmem>>, vector<1x128xf32>
    %4 = vector.broadcast %3 : vector<1x128xf32> to vector<128x128xf32>
    %5 = arith.addf %2, %4 : vector<128x128xf32>
    %cst_5 = arith.constant 1.000000e-01 : f32
    %6 = vector.broadcast %cst_5 : f32 to vector<128x128xf32>
    %7 = arith.mulf %6, %5 : vector<128x128xf32>
    %8 = arith.maximumf %5, %7 : vector<128x128xf32>
    %c0_6 = arith.constant 0 : index
    %c0_7 = arith.constant 0 : index
    %9 = vector.load %arg4[%c0_6, %c0_7] : memref<1x128xf32, #tpu.memory_space<vmem>>, vector<1x128xf32>
    %cst_8 = arith.constant dense<0.000000e+00> : vector<1x128xf32>
    %10 = tpu.matmul %9, %8, %cst_8 {dimension_numbers = #tpu.dot_dimension_numbers<[1], [1], [0], [0], [0, 0, 1, 0], [], []>} : vector<1x128xf32>, vector<128x128xf32>, vector<1x128xf32> -> vector<1x128xf32>
    %c0_9 = arith.constant 0 : index
    %11 = memref.load %arg5[%c0_9] : memref<1xf32, #tpu.memory_space<smem>>
    %12 = vector.broadcast %11 : f32 to vector<1x128xf32>
    %13 = arith.addf %10, %12 : vector<1x128xf32>
    %cst_10 = arith.constant 0.000000e+00 : f32
    %14 = vector.broadcast %cst_10 : f32 to vector<1x128xf32>
    %15 = arith.subf %14, %13 : vector<1x128xf32>
    %16 = math.exp %15 : vector<1x128xf32>
    %cst_11 = arith.constant 1.000000e+00 : f32
    %17 = vector.broadcast %cst_11 : f32 to vector<1x128xf32>
    %18 = arith.addf %17, %16 : vector<1x128xf32>
    %19 = tpu.reciprocal %18 {approx = true} : vector<1x128xf32> -> vector<1x128xf32>
    %20 = vector.shape_cast %19 : vector<1x128xf32> to vector<1x1x128xf32>
    %c0_12 = arith.constant 0 : index
    %c0_13 = arith.constant 0 : index
    %c0_14 = arith.constant 0 : index
    %21 = vector.load %arg6[%c0_12, %c0_13, %c0_14] : memref<1x1x128xf32, #tpu.memory_space<vmem>>, vector<1x1x128xf32>
    tpu.vector_store %arg6[%c0_12, %c0_13, %c0_14], %20 {strides = array<i32>} : memref<1x1x128xf32, #tpu.memory_space<vmem>>, vector<1x1x128xf32>,
    return
  }
  func.func @transform_0(%arg0: i32) -> (i32, i32) {
    %c0_i32 = arith.constant 0 : i32
    %c0_i32_0 = arith.constant 0 : i32
    return %arg0, %c0_i32 : i32, i32
  }
  func.func @transform_1(%arg0: i32) -> (i32, i32) {
    %c0_i32 = arith.constant 0 : i32
    %c0_i32_0 = arith.constant 0 : i32
    %c0_i32_1 = arith.constant 0 : i32
    return %c0_i32, %c0_i32_0 : i32, i32
  }
  func.func @transform_2(%arg0: i32) -> (i32, i32) {
    %c0_i32 = arith.constant 0 : i32
    %c0_i32_0 = arith.constant 0 : i32
    %c0_i32_1 = arith.constant 0 : i32
    return %c0_i32, %c0_i32_0 : i32, i32
  }
  func.func @transform_3(%arg0: i32) -> (i32, i32) {
    %c0_i32 = arith.constant 0 : i32
    %c0_i32_0 = arith.constant 0 : i32
    %c0_i32_1 = arith.constant 0 : i32
    return %c0_i32, %c0_i32_0 : i32, i32
  }
  func.func @transform_4(%arg0: i32) -> i32 {
    %c0_i32 = arith.constant 0 : i32
    %c0_i32_0 = arith.constant 0 : i32
    return %c0_i32 : i32
  }
  func.func @transform_5(%arg0: i32) -> (i32, i32, i32) {
    %c0_i32 = arith.constant 0 : i32
    %c0_i32_0 = arith.constant 0 : i32
    %c0_i32_1 = arith.constant 0 : i32
    return %arg0, %c0_i32, %c0_i32_0 : i32, i32, i32
  }
}

</mosaic_0001>

<bundles_post_ra>
// kernel: tpu_custom_call.1
= control target key start
LH: loop header
LB: loop body
LE: loop exit
PB: predicated region body
PF: predicated region fallthrough
CT: control target
= control target key end

     0   :  { %11 = vsyncpa [#allocation4], 0  ;;  %s722_s0 = inlined_call_operand.hbm [shape: bf16[128,128], index: 0, kind: input, shape index: {}]   ;;  %s723_s1 = inlined_call_operand.hbm [shape: bf16[128,128], index: 1, kind: input, shape index: {}]   ;;  %s724_s2 = inlined_call_operand.vmem [shape: f32[1,128], index: 2, kind: input, shape index: {}]   ;;  %s725_s3 = inlined_call_operand.vmem [shape: f32[1,128], index: 3, kind: input, shape index: {}]   ;;  %s726_s4 = inlined_call_operand.<no memory space> [shape: f32[1], index: 4, kind: input, shape index: {}]   ;;  %s727_s5 = inlined_call_operand.hbm [shape: f32[1,1,128], index: 5, kind: output, shape index: {}]  }
   0x1   :  { %12 = vsyncpa [#allocation7], 0 }
   0x2   :  { %13 = vsyncpa [#allocation5], 0  ;;  %s620_s18 = smov [#allocation3]  }
   0x3   :  { %s19_s19 = sshll.u32 %s620_s18, 4  ;;  %s20_s19 = int_to_ptr.vmem [resolvable:$true] %s19_s19 }
   0x4   :  { %s562_s20 = scalar_lea.vmem %s20_s19, 1024  ;;  %p567_p1 = scmp.lt.s32.totalorder %s20_s19, %s20_s19 }
   0x5   :  { %p563_p0 = scmp.ne.s32.totalorder %s20_s19, %s562_s20  ;;  %p568_p2 = scmp.lt.s32.totalorder %s562_s20, %s562_s20 }
   0x7   :  { %p569_p3 = por %p568_p2, %p567_p1 }
   0x9   :  { %p570_p4 = pnand %p569_p3, %p563_p0 }
   0xb   :  { %573 = shalt.err (!%p570_p4)
}
   0xc   :  { %s621_s21 = smov 64   ;;  %s622_s22 = smov 4  }
   0xd   :  { %25 = dma.hbm_to_vmem [thread:$0]  %s722_s0, 1024, %s20_s19, [#allocation4], %s621_s21, %s621_s21, %s622_s22  }
   0xe   :  { %s623_s25 = smov [#allocation6]  }
   0xf   :  { %s31_s26 = sshll.u32 %s623_s25, 4  ;;  %s32_s26 = int_to_ptr.vmem [resolvable:$true] %s31_s26 }
  0x10   :  { %s582_s27 = scalar_lea.vmem %s32_s26, 1024  ;;  %p587_p6 = scmp.lt.s32.totalorder %s32_s26, %s32_s26 }
  0x11   :  { %p583_p5 = scmp.ne.s32.totalorder %s32_s26, %s582_s27  ;;  %p588_p7 = scmp.lt.s32.totalorder %s582_s27, %s582_s27 }
  0x13   :  { %p589_p8 = por %p588_p7, %p587_p6 }
  0x15   :  { %p590_p9 = pnand %p589_p8, %p583_p5 }
  0x17   :  { %593 = shalt.err (!%p590_p9)
}
  0x18   :  { %37 = dma.hbm_to_vmem [thread:$0]  %s723_s1, 1024, %s32_s26, [#allocation7], %s621_s21, %s621_s21, %s622_s22  }
  0x19   :  { %614 = dma.done.wait [#allocation4], 1024  }
  0x1a   :  { %615 = vsyncadd [#allocation4], 4294966272 }
  0x1b   :  { %616 = dma.done.wait [#allocation7], 1024  }
  0x1c   :  { %617 = vsyncadd [#allocation7], 4294966272  ;;  %v534_v0 = vld [vmem:[#allocation6 + $0x38] sm:$0xff]   ;;  %v535_v1 = vld [vmem:[#allocation6 + $0x30] sm:$0xff]   ;;  %v624_v16 = vmov 0.0   ;;  %vm625_vm0 = vmmov 0  }
  0x1d   :  { %460 = vmatprep.subr.bf16.mxu0 %v534_v0  ;;  %v536_v2 = vld [vmem:[#allocation6 + $0x28] sm:$0xff]   ;;  %v537_v3 = vld [vmem:[#allocation6 + $0x20] sm:$0xff]   ;;  %v538_v5 = vld [vmem:[#allocation6 + $0x18] sm:$0xff]   ;;  %492 = vmatprep.subr.mxu1 %v624_v16  ;;  %s626_s8 = smov [#allocation8]  }
  0x1e   :  { %461 = vmatpush3.bf16.msra.mxu0 %v534_v0  ;;  %v542_v4 = vld [vmem:[#allocation3] sm:$0xff]   ;;  %v539_v6 = vld [vmem:[#allocation6 + $0x10] sm:$0xff]   ;;  %v540_v7 = vld [vmem:[#allocation6 + $0x8] sm:$0xff]   ;;  %524 = vmatprep.mubr.msk.f32.mxu1 %vm625_vm0, %v624_v16  ;;  %s400_s9 = sshll.u32 %s626_s8, 4  ;;  %s401_s9 = int_to_ptr.vmem [resolvable:$true] %s400_s9 }
  0x1f   :  { %462 = vmatprep.subr.bf16.mxu0 %v535_v1  ;;  %476 = vmatprep.mubr.bf16.mxu0 %v542_v4  ;;  %v541_v8 = vld [vmem:[#allocation6] sm:$0xff]   ;;  %v543_v9 = vld [vmem:[#allocation3 + $0x8] sm:$0xff]   ;;  %v544_v10 = vld [vmem:[#allocation3 + $0x10] sm:$0xff]   ;;  %s598_s10 = scalar_lea.vmem %s401_s9, 32  ;;  %p599_p11 = scmp.lt.s32.totalorder %s401_s9, %s401_s9 }
  0x20   :  { %v545_v11 = vld [vmem:[#allocation3 + $0x18] sm:$0xff]   ;;  %v546_v12 = vld [vmem:[#allocation3 + $0x20] sm:$0xff]   ;;  %v547_v13 = vld [vmem:[#allocation3 + $0x28] sm:$0xff]  }
  0x21   :  { %v548_v14 = vld [vmem:[#allocation3 + $0x30] sm:$0xff]   ;;  %v549_v15 = vld [vmem:[#allocation3 + $0x38] sm:$0xff]   ;;  %v676_v31 = vld [vmem:[%s724_s2] ss:$0 sm:$0xff] }
  0x22   :  { %463 = vmatpush3.bf16.msra.mxu0 %v535_v1 }
  0x23   :  { %464 = vmatprep.subr.bf16.mxu0 %v536_v2 }
  0x26   :  { %465 = vmatpush3.bf16.msra.mxu0 %v536_v2 }
  0x27   :  { %466 = vmatprep.subr.bf16.mxu0 %v537_v3 }
  0x2a   :  { %467 = vmatpush3.bf16.msra.mxu0 %v537_v3 }
  0x2b   :  { %468 = vmatprep.subr.bf16.mxu0 %v538_v5 }
  0x2e   :  { %469 = vmatpush3.bf16.msra.mxu0 %v538_v5 }
  0x2f   :  { %470 = vmatprep.subr.bf16.mxu0 %v539_v6 }
  0x32   :  { %471 = vmatpush3.bf16.msra.mxu0 %v539_v6 }
  0x33   :  { %472 = vmatprep.subr.bf16.mxu0 %v540_v7 }
  0x36   :  { %473 = vmatpush3.bf16.msra.mxu0 %v540_v7 }
  0x37   :  { %474 = vmatprep.subr.bf16.mxu0 %v541_v8 }
  0x3a   :  { %475 = vmatpush3.bf16.msra.mxu0 %v541_v8 }
  0x3d   :  { %477 = vmatmul.mubr.bf16.vlgmr.msra.gmra.mxu0 %v543_v9 }
  0x3e   :  { %480 = vmatprep.mubr.bf16.mxu0 %v544_v10 }
  0x45   :  { %481 = vmatmul.mubr.bf16.gmra.mxu0 %v545_v11 }
  0x46   :  { %484 = vmatprep.mubr.bf16.mxu0 %v546_v12 }
  0x4d   :  { %485 = vmatmul.mubr.bf16.gmra.mxu0 %v547_v13 }
  0x4e   :  { %488 = vmatprep.mubr.bf16.mxu0 %v548_v14 }
  0x55   :  { %489 = vmatmul.mubr.bf16.gmra.mxu0 %v549_v15 }
  0xfd   :  { %v665_v17 = vpop.f32.mrf.mxu0 }
  0xfe   :  { %v229_v6 = vadd.f32 %v665_v17, %v676_v31 }
  0xff   :  { %v667_v18 = vpop.f32.mrf.mxu0 }
 0x100   :  { %v285_v9 = vmul.f32 0.1, %v229_v6  ;;  %v221_v13 = vadd.f32 %v676_v31, %v667_v18  ;;  %v317_v18 = vstv %s726_s4 }
 0x101   :  { %v669_v19 = vpop.f32.mrf.mxu0 }
 0x102   :  { %v232_v3 = vadd.f32 %v669_v19, %v676_v31  ;;  %v301_v12 = vmax.f32 %v229_v6, %v285_v9  ;;  %v283_v15 = vmul.f32 0.1, %v221_v13 }
 0x103   :  { %v671_v20 = vpop.f32.mrf.mxu0 }
 0x104   :  { %v286_v7 = vmul.f32 0.1, %v232_v3  ;;  %v224_v11 = vadd.f32 %v676_v31, %v671_v20  ;;  %v299_v19 = vmax.f32 %v221_v13, %v283_v15  ;;  %v315_v20 = vld [vmem:[%s725_s3] sm:$0x1]  ;;  %s594_s3 = scalar_lea.vmem %s401_s9, 16 }
 0x105   :  { %v482_v21 = vpop.f32.mrf.mxu0  ;;  %p595_p10 = scmp.ne.s32.totalorder %s401_s9, %s594_s3  ;;  %p600_p12 = scmp.lt.s32.totalorder %s598_s10, %s594_s3 }
 0x106   :  { %v245_v58 = vadd.f32 %v482_v21, %v676_v31  ;;  %v302_v10 = vmax.f32 %v232_v3, %v286_v7  ;;  %v284_v14 = vmul.f32 0.1, %v224_v11 }
 0x107   :  { %v236_v22 = vpop.f32.mrf.mxu0  ;;  %p601_p13 = por %p600_p12, %p599_p11 }
 0x108   :  { %v289_v61 = vmul.f32 0.1, %v245_v58  ;;  %v237_v1 = vadd.f32 %v676_v31, %v236_v22  ;;  %v300_v17 = vmax.f32 %v224_v11, %v284_v14 }
 0x109   :  { %v483_v23 = vpop.f32.mrf.mxu0  ;;  %p602_p0 = pnand %p601_p13, %p595_p10 }
 0x10a   :  { %v248_v55 = vadd.f32 %v483_v23, %v676_v31  ;;  %v305_v0 = vmax.f32 %v245_v58, %v289_v61  ;;  %v287_v4 = vmul.f32 0.1, %v237_v1 }
 0x10b   :  { %v239_v24 = vpop.f32.mrf.mxu0 }
 0x10c   :  { %v290_v59 = vmul.f32 0.1, %v248_v55  ;;  %v240_v63 = vadd.f32 %v676_v31, %v239_v24  ;;  %v303_v8 = vmax.f32 %v237_v1, %v287_v4 }
 0x10d   :  { %v486_v25 = vpop.f32.mrf.mxu0 }
 0x10e   :  { %v261_v46 = vadd.f32 %v486_v25, %v676_v31  ;;  %v306_v62 = vmax.f32 %v248_v55, %v290_v59  ;;  %v288_v2 = vmul.f32 0.1, %v240_v63 }
 0x10f   :  { %v252_v26 = vpop.f32.mrf.mxu0 }
 0x110   :  { %v293_v49 = vmul.f32 0.1, %v261_v46  ;;  %v253_v53 = vadd.f32 %v676_v31, %v252_v26  ;;  %v304_v5 = vmax.f32 %v240_v63, %v288_v2 }
 0x111   :  { %v487_v27 = vpop.f32.mrf.mxu0 }
 0x112   :  { %v264_v43 = vadd.f32 %v487_v27, %v676_v31  ;;  %v309_v52 = vmax.f32 %v261_v46, %v293_v49  ;;  %v291_v56 = vmul.f32 0.1, %v253_v53 }
 0x113   :  { %v255_v28 = vpop.f32.mrf.mxu0 }
 0x114   :  { %v294_v47 = vmul.f32 0.1, %v264_v43  ;;  %v256_v51 = vadd.f32 %v676_v31, %v255_v28  ;;  %v307_v60 = vmax.f32 %v253_v53, %v291_v56 }
 0x115   :  { %v490_v29 = vpop.f32.mrf.mxu0 }
 0x116   :  { %v277_v33 = vadd.f32 %v490_v29, %v676_v31  ;;  %v310_v50 = vmax.f32 %v264_v43, %v294_v47  ;;  %v292_v54 = vmul.f32 0.1, %v256_v51 }
 0x117   :  { %v268_v30 = vpop.f32.mrf.mxu0 }
 0x118   :  { %v297_v37 = vmul.f32 0.1, %v277_v33  ;;  %v269_v41 = vadd.f32 %v676_v31, %v268_v30  ;;  %v308_v57 = vmax.f32 %v256_v51, %v292_v54 }
 0x119   :  { %v491_v32 = vpop.f32.mrf.mxu0 }
 0x11a   :  { %v280_v34 = vadd.f32 %v491_v32, %v676_v31  ;;  %v313_v40 = vmax.f32 %v277_v33, %v297_v37  ;;  %v295_v44 = vmul.f32 0.1, %v269_v41 }
 0x11b   :  { %v271_v35 = vpop.f32.mrf.mxu0 }
 0x11c   :  { %v298_v36 = vmul.f32 0.1, %v280_v34  ;;  %v272_v38 = vadd.f32 %v676_v31, %v271_v35  ;;  %v311_v48 = vmax.f32 %v269_v41, %v295_v44 }
 0x11e   :  { %v314_v39 = vmax.f32 %v280_v34, %v298_v36  ;;  %v296_v42 = vmul.f32 0.1, %v272_v38 }
 0x120   :  { %493 = vmatpush3.xpose.msra.mxu1 %v314_v39  ;;  %v312_v45 = vmax.f32 %v272_v38, %v296_v42 }
 0x121   :  { %494 = vmatprep.subr.mxu1 %v624_v16 }
 0x124   :  { %495 = vmatpush3.xpose.msra.mxu1 %v313_v40 }
 0x125   :  { %496 = vmatprep.subr.mxu1 %v624_v16 }
 0x128   :  { %497 = vmatpush3.xpose.msra.mxu1 %v312_v45 }
 0x129   :  { %498 = vmatprep.subr.mxu1 %v624_v16 }
 0x12c   :  { %499 = vmatpush3.xpose.msra.mxu1 %v311_v48 }
 0x12d   :  { %500 = vmatprep.subr.mxu1 %v624_v16 }
 0x130   :  { %501 = vmatpush3.xpose.msra.mxu1 %v310_v50 }
 0x131   :  { %502 = vmatprep.subr.mxu1 %v624_v16 }
 0x134   :  { %503 = vmatpush3.xpose.msra.mxu1 %v309_v52 }
 0x135   :  { %504 = vmatprep.subr.mxu1 %v624_v16 }
 0x138   :  { %505 = vmatpush3.xpose.msra.mxu1 %v308_v57 }
 0x139   :  { %506 = vmatprep.subr.mxu1 %v624_v16 }
 0x13c   :  { %507 = vmatpush3.xpose.msra.mxu1 %v307_v60 }
 0x13d   :  { %508 = vmatprep.subr.mxu1 %v624_v16 }
 0x140   :  { %509 = vmatpush3.xpose.msra.mxu1 %v306_v62 }
 0x141   :  { %510 = vmatprep.subr.mxu1 %v624_v16 }
 0x144   :  { %511 = vmatpush3.xpose.msra.mxu1 %v305_v0 }
 0x145   :  { %512 = vmatprep.subr.mxu1 %v624_v16 }
 0x148   :  { %513 = vmatpush3.xpose.msra.mxu1 %v304_v5 }
 0x149   :  { %514 = vmatprep.subr.mxu1 %v624_v16 }
 0x14c   :  { %515 = vmatpush3.xpose.msra.mxu1 %v303_v8 }
 0x14d   :  { %516 = vmatprep.subr.mxu1 %v624_v16 }
 0x150   :  { %517 = vmatpush3.xpose.msra.mxu1 %v302_v10 }
 0x151   :  { %518 = vmatprep.subr.mxu1 %v624_v16 }
 0x154   :  { %519 = vmatpush3.xpose.msra.mxu1 %v301_v12 }
 0x155   :  { %520 = vmatprep.subr.mxu1 %v624_v16 }
 0x158   :  { %521 = vmatpush3.xpose.msra.mxu1 %v300_v17 }
 0x159   :  { %522 = vmatprep.subr.mxu1 %v624_v16 }
 0x15c   :  { %523 = vmatpush3.xpose.msra.mxu1 %v299_v19 }
 0x15f   :  { %525 = vmatmul.mubr.f32.vlgmr.msra.gmra.mxu1 %v315_v20 }
 0x21f   :  { %v384_v21 = vpop.f32.mrf.mxu1 }
 0x220   :  { %v385_v22 = vadd.f32 %v384_v21, %v317_v18 }
 0x221   :  { %v526_v23 = vpop.f32.mrf.mxu1 }
 0x222   :  { %v388_v24 = vsub.f32 0.0, %v385_v22 }
 0x224   :  { %v389_v25 = vmul.f32 1.442695, %v388_v24 }
 0x226   :  { %550 = vpow2.f32 %v389_v25 }
 0x233   :  { %v551_v26 = vpop.eup %550 }
 0x234   :  { %v391_v27 = vadd.f32 1.0, %v551_v26 }
 0x236   :  { %552 = vrcp.f32 %v391_v27 }
 0x243   :  { %v553_v16 = vpop.eup %552 }
 0x244   :  { %393 = vst [vmem:[#allocation8] sm:$0x1] %v553_v16 }
 0x245   :  { %605 = shalt.err (!%p602_p0)
}
 0x246   :  { %403 = dma.vmem_to_hbm [thread:$0]  %s401_s9, 16, %s727_s5, [#allocation5]  }
 0x247   :  { %618 = dma.done.wait [#allocation5], 16  }
 0x248   :  { %619 = vsyncadd [#allocation5], 4294967280 }
 0x249   :  { %407 = vsyncpa [#allocation4], 1 }
 0x24a   :  { %408 = vsyncpa [#allocation7], 1 }
 0x24b   :  { %409 = vsyncpa [#allocation5], 1 }

</bundles_post_ra>
